<compile_context>
chip_gen: v5e
topology: v5e:2x2
jax: 0.10.0
libtpu: 0.0.40
codegen_flags: <defaults>
</compile_context>

<pallas_src>
import functools

import jax
import jax.numpy as jnp
from jax import lax
from jax.experimental import pallas as pl
from jax.experimental.pallas import tpu as pltpu


# TODO(synk): dilation > 1 not supported (the original module keeps padding=1, so
#             dilation > 1 changes the sequence length and breaks its own residual).
# TODO(synk): activation='prelu' (learned slope parameter) not implemented.


def _tdnn_block_kernel(x_ref, w1_ref, w2_ref, s1_ref, b1_ref, s2_ref, b2_ref,
                       o_ref, *, negative_slope):
    Bb, T, Cin = x_ref.shape
    R = Bb * T

    x2 = x_ref[...].reshape(R, Cin)                       # rows are batch-major time

    # Local time index within each batch element (rows r = b*T + t  ->  t = r % T).
    t_local = lax.broadcasted_iota(jnp.int32, (R, 1), 0) % T

    def act(v):
        if negative_slope == 0.0:
            return jnp.maximum(v, 0.0)
        return jnp.where(v >= 0.0, v, v * negative_slope)

    def conv3(v2, w_ref):
        # v2: (R, C_in); w_ref: (3, C_in, C_out). Zero-padded k=3 conv over time.
        acc = jnp.dot(v2, w_ref[1], preferred_element_type=jnp.float32)  # center tap
        for k in (0, 2):
            off = k - 1
            # result[r] = v2[r + off] when the neighbor is inside the same batch
            # element's [0, T) window; otherwise zero (conv zero padding).
            rolled = pltpu.roll(v2, shift=(-off) % R, axis=0)
            valid = jnp.logical_and(t_local + off >= 0, t_local + off < T)
            shifted = jnp.where(valid, rolled, 0.0)
            acc = acc + jnp.dot(shifted, w_ref[k], preferred_element_type=jnp.float32)
        return acc

    # conv1 -> folded BN1 -> activation
    h = act(conv3(x2, w1_ref) * s1_ref[...] + b1_ref[...])
    # conv2 -> folded BN2 -> residual -> activation (fused before the single store)
    y = conv3(h, w2_ref) * s2_ref[...] + b2_ref[...]
    y = act(y + x2)

    o_ref[...] = y.reshape(Bb, T, -1).astype(o_ref.dtype)


def _choose_block_b(B, T, C, bytes_budget=4 << 20):
    """Largest divisor of B whose (T, C) f32 slab fits the per-buffer budget,
    keeping >=2 grid steps when possible (v7x has 2 TensorCores)."""
    per_b = max(T * C * 4, 1)
    bb = max(1, min(B, bytes_budget // per_b))
    if bb >= B and B > 1:
        bb = max(1, B // 2)
    while B % bb:
        bb -= 1
    return bb


def tdnn_block_v2(x, w1, w2, bn1, bn2, *, activation="relu", eps=1e-5, block_b=None):
    """x: (B, T, Cin) f32. w1: (Cmid, Cin, 3), w2: (Cout, Cmid, 3) PyTorch Conv1d
    weights (bias=False). bn1/bn2: (gamma, beta, running_mean, running_var)."""
    B, T, Cin = x.shape
    Cmid = w1.shape[0]
    Cout = w2.shape[0]
    assert w1.shape == (Cmid, Cin, 3) and w2.shape == (Cout, Cmid, 3)
    assert Cout == Cin, "residual add requires planes == inplanes"

    if activation == "relu":
        slope = 0.0
    elif activation in ("leakyrelu", "leaky_relu"):
        slope = 0.01
    else:
        raise NotImplementedError(f"activation={activation!r} not supported")

    # Fold eval-mode BatchNorm into per-channel scale/shift (lane vectors).
    g1, be1, m1, v1 = bn1
    g2, be2, m2, v2 = bn2
    s1 = (g1 / jnp.sqrt(v1 + eps)).astype(jnp.float32)
    sh1 = (be1 - m1 * s1).astype(jnp.float32)
    s2 = (g2 / jnp.sqrt(v2 + eps)).astype(jnp.float32)
    sh2 = (be2 - m2 * s2).astype(jnp.float32)

    # (Cout, Cin, K) -> (K, Cin, Cout) so each tap is a right-multiply matmul.
    w1m = jnp.transpose(w1, (2, 1, 0)).astype(jnp.float32)
    w2m = jnp.transpose(w2, (2, 1, 0)).astype(jnp.float32)

    bb = _choose_block_b(B, T, max(Cin, Cmid)) if block_b is None else block_b
    assert B % bb == 0
    grid = (B // bb,)

    kernel = functools.partial(_tdnn_block_kernel, negative_slope=slope)
    return pl.pallas_call(
        kernel,
        out_shape=jax.ShapeDtypeStruct((B, T, Cout), x.dtype),
        grid=grid,
        in_specs=[
            pl.BlockSpec((bb, T, Cin), lambda b: (b, 0, 0)),     # x slab
            pl.BlockSpec((3, Cin, Cmid), lambda b: (0, 0, 0)),   # w1 (resident)
            pl.BlockSpec((3, Cmid, Cout), lambda b: (0, 0, 0)),  # w2 (resident)
            pl.BlockSpec((1, Cmid), lambda b: (0, 0)),           # BN1 scale
            pl.BlockSpec((1, Cmid), lambda b: (0, 0)),           # BN1 shift
            pl.BlockSpec((1, Cout), lambda b: (0, 0)),           # BN2 scale
            pl.BlockSpec((1, Cout), lambda b: (0, 0)),           # BN2 shift
        ],
        out_specs=pl.BlockSpec((bb, T, Cout), lambda b: (b, 0, 0)),
        compiler_params=pltpu.CompilerParams(dimension_semantics=("parallel",)),
    )(x, w1m, w2m,
      s1.reshape(1, Cmid), sh1.reshape(1, Cmid),
      s2.reshape(1, Cout), sh2.reshape(1, Cout))


def tdnn_block_v2_reference(x, w1, w2, bn1, bn2, *, activation="relu", eps=1e-5):
    """Pure-JAX mirror of the PyTorch forward (BN in eval mode)."""
    B, T, Cin = x.shape

    def conv1d_k3_p1(v, w):          # v: (B, T, Ci), w: (Co, Ci, 3)
        vp = jnp.pad(v, ((0, 0), (1, 1), (0, 0)))
        return sum(jnp.einsum('btc,dc->btd', vp[:, k:k + T, :], w[:, :, k])
                   for k in range(3))

    def bn(v, params):
        g, b, m, var = params
        return (v - m) / jnp.sqrt(var + eps) * g + b

    def act(v):
        if activation == "relu":
            return jnp.maximum(v, 0.0)
        return jnp.where(v >= 0.0, v, 0.01 * v)

    h = act(bn(conv1d_k3_p1(x, w1), bn1))
    y = bn(conv1d_k3_p1(h, w2), bn2)
    return act(y + x)


if __name__ == "__main__":
    key = jax.random.PRNGKey(0)
    keys = jax.random.split(key, 12)

    # inplanes = planes = 32, downsample=None -> inter_connect = 32, dilation=1.
    B, T, C = 4, 16, 32
    Cmid = C

    x = jax.random.normal(keys[0], (B, T, C), dtype=jnp.float32)

    bound1 = 1.0 / jnp.sqrt(3.0 * C)
    bound2 = 1.0 / jnp.sqrt(3.0 * Cmid)
    w1 = jax.random.uniform(keys[1], (Cmid, C, 3), jnp.float32, -bound1, bound1)
    w2 = jax.random.uniform(keys[2], (C, Cmid, 3), jnp.float32, -bound2, bound2)

    bn1 = (jax.random.uniform(keys[3], (Cmid,), jnp.float32, 0.5, 1.5),   # gamma
           0.1 * jax.random.normal(keys[4], (Cmid,), jnp.float32),        # beta
           0.1 * jax.random.normal(keys[5], (Cmid,), jnp.float32),        # running mean
           jax.random.uniform(keys[6], (Cmid,), jnp.float32, 0.5, 1.5))   # running var
    bn2 = (jax.random.uniform(keys[7], (C,), jnp.float32, 0.5, 1.5),
           0.1 * jax.random.normal(keys[8], (C,), jnp.float32),
           0.1 * jax.random.normal(keys[9], (C,), jnp.float32),
           jax.random.uniform(keys[10], (C,), jnp.float32, 0.5, 1.5))

    out = tdnn_block_v2(x, w1, w2, bn1, bn2, activation="relu")
    out = jax.block_until_ready(out)

    ref = tdnn_block_v2_reference(x, w1, w2, bn1, bn2, activation="relu")
    assert out.shape == (B, T, C)
    assert jnp.allclose(out, ref, atol=1e-4, rtol=1e-4), "mismatch vs reference"

    print("KERNEL_OK")
</pallas_src>

<mosaic_0001>
module attributes {stable_mosaic.version = 11 : i64} {
  func.func @_tdnn_block_kernel(%arg0: i32, %arg1: memref<2x16x32xf32, #tpu.memory_space<vmem>>, %arg2: memref<3x32x32xf32, #tpu.memory_space<vmem>>, %arg3: memref<3x32x32xf32, #tpu.memory_space<vmem>>, %arg4: memref<1x32xf32, #tpu.memory_space<vmem>>, %arg5: memref<1x32xf32, #tpu.memory_space<vmem>>, %arg6: memref<1x32xf32, #tpu.memory_space<vmem>>, %arg7: memref<1x32xf32, #tpu.memory_space<vmem>>, %arg8: memref<2x16x32xf32, #tpu.memory_space<vmem>>) attributes {dimension_semantics = [#tpu.dimension_semantics<parallel>], iteration_bounds = array<i64: 2>, scalar_prefetch = 0 : i64, scratch_operands = 0 : i64, tpu.core_type = #tpu.core_type<tc>, window_params = [{transform_indices = @transform_0, window_bounds = array<i64: 2, 16, 32>}, {pipeline_mode = #tpu.pipeline_mode<synchronous>, transform_indices = @transform_1, window_bounds = array<i64: 3, 32, 32>}, {pipeline_mode = #tpu.pipeline_mode<synchronous>, transform_indices = @transform_2, window_bounds = array<i64: 3, 32, 32>}, {pipeline_mode = #tpu.pipeline_mode<synchronous>, transform_indices = @transform_3, window_bounds = array<i64: 1, 32>}, {pipeline_mode = #tpu.pipeline_mode<synchronous>, transform_indices = @transform_4, window_bounds = array<i64: 1, 32>}, {pipeline_mode = #tpu.pipeline_mode<synchronous>, transform_indices = @transform_5, window_bounds = array<i64: 1, 32>}, {pipeline_mode = #tpu.pipeline_mode<synchronous>, transform_indices = @transform_6, window_bounds = array<i64: 1, 32>}, {transform_indices = @transform_7, window_bounds = array<i64: 2, 16, 32>}]} {
    %c0 = arith.constant 0 : index
    %c0_0 = arith.constant 0 : index
    %c0_1 = arith.constant 0 : index
    %0 = vector.load %arg1[%c0, %c0_0, %c0_1] : memref<2x16x32xf32, #tpu.memory_space<vmem>>, vector<2x16x32xf32>
    %1 = vector.shape_cast %0 : vector<2x16x32xf32> to vector<32x32xf32>
    %2 = tpu.iota {dimensions = array<i32: 0>} : vector<32x1xi32>
    %c16_i32 = arith.constant 16 : i32
    %c0_i32 = arith.constant 0 : i32
    %3 = arith.cmpi eq, %c16_i32, %c0_i32 : i32
    %c1_i32 = arith.constant 1 : i32
    %4 = arith.select %3, %c1_i32, %c16_i32 : i32
    %5 = vector.broadcast %4 : i32 to vector<32x1xi32>
    %6 = arith.remsi %2, %5 : vector<32x1xi32>
    %c0_i32_2 = arith.constant 0 : i32
    %7 = vector.broadcast %c0_i32_2 : i32 to vector<32x1xi32>
    %8 = arith.cmpi ne, %6, %7 : vector<32x1xi32>
    %c0_i32_3 = arith.constant 0 : i32
    %9 = vector.broadcast %c0_i32_3 : i32 to vector<32x1xi32>
    %10 = arith.cmpi slt, %6, %9 : vector<32x1xi32>
    %c0_i32_4 = arith.constant 0 : i32
    %11 = arith.cmpi slt, %4, %c0_i32_4 : i32
    %12 = vector.broadcast %11 : i1 to vector<32x1xi1>
    %13 = vector.broadcast %12 : vector<32x1xi1> to vector<32x1xi1>
    %14 = arith.xori %10, %13 : vector<32x1xi1>
    %15 = arith.andi %14, %8 : vector<32x1xi1>
    %16 = vector.broadcast %4 : i32 to vector<32x1xi32>
    %17 = arith.addi %6, %16 : vector<32x1xi32>
    %18 = arith.select %15, %17, %6 : vector<32x1xi1>, vector<32x1xi32>
    %c1 = arith.constant 1 : index
    %c0_5 = arith.constant 0 : index
    %c0_6 = arith.constant 0 : index
    %19 = vector.load %arg2[%c1, %c0_5, %c0_6] : memref<3x32x32xf32, #tpu.memory_space<vmem>>, vector<1x32x32xf32>
    %20 = vector.shape_cast %19 : vector<1x32x32xf32> to vector<32x32xf32>
    %cst = arith.constant dense<0.000000e+00> : vector<32x32xf32>
    %21 = tpu.matmul %1, %20, %cst {dimension_numbers = #tpu.dot_dimension_numbers<[1], [0], [0], [1], [0, 0, 1, 1], [], []>} : vector<32x32xf32>, vector<32x32xf32>, vector<32x32xf32> -> vector<32x32xf32>
    %c1_i32_7 = arith.constant 1 : i32
    %22 = tpu.dynamic_rotate %1 by %c1_i32_7 dim 0 : vector<32x32xf32>, i32 -> vector<32x32xf32>
    %c-1_i32 = arith.constant -1 : i32
    %23 = vector.broadcast %c-1_i32 : i32 to vector<32x1xi32>
    %24 = arith.addi %18, %23 : vector<32x1xi32>
    %c0_i32_8 = arith.constant 0 : i32
    %25 = vector.broadcast %c0_i32_8 : i32 to vector<32x1xi32>
    %26 = arith.cmpi sge, %24, %25 : vector<32x1xi32>
    %c-1_i32_9 = arith.constant -1 : i32
    %27 = vector.broadcast %c-1_i32_9 : i32 to vector<32x1xi32>
    %28 = arith.addi %18, %27 : vector<32x1xi32>
    %c16_i32_10 = arith.constant 16 : i32
    %29 = vector.broadcast %c16_i32_10 : i32 to vector<32x1xi32>
    %30 = arith.cmpi slt, %28, %29 : vector<32x1xi32>
    %31 = arith.andi %26, %30 : vector<32x1xi1>
    %cst_11 = arith.constant 0.000000e+00 : f32
    %32 = vector.shape_cast %31 : vector<32x1xi1> to vector<32x1xi1>
    %33 = vector.broadcast %32 : vector<32x1xi1> to vector<32x32xi1>
    %34 = vector.broadcast %cst_11 : f32 to vector<32x32xf32>
    %35 = arith.select %33, %22, %34 : vector<32x32xi1>, vector<32x32xf32>
    %c0_12 = arith.constant 0 : index
    %c0_13 = arith.constant 0 : index
    %c0_14 = arith.constant 0 : index
    %36 = vector.load %arg2[%c0_12, %c0_13, %c0_14] : memref<3x32x32xf32, #tpu.memory_space<vmem>>, vector<1x32x32xf32>
    %37 = vector.shape_cast %36 : vector<1x32x32xf32> to vector<32x32xf32>
    %cst_15 = arith.constant dense<0.000000e+00> : vector<32x32xf32>
    %38 = tpu.matmul %35, %37, %cst_15 {dimension_numbers = #tpu.dot_dimension_numbers<[1], [0], [0], [1], [0, 0, 1, 1], [], []>} : vector<32x32xf32>, vector<32x32xf32>, vector<32x32xf32> -> vector<32x32xf32>
    %39 = arith.addf %21, %38 : vector<32x32xf32>
    %c31_i32 = arith.constant 31 : i32
    %40 = tpu.dynamic_rotate %1 by %c31_i32 dim 0 : vector<32x32xf32>, i32 -> vector<32x32xf32>
    %c1_i32_16 = arith.constant 1 : i32
    %41 = vector.broadcast %c1_i32_16 : i32 to vector<32x1xi32>
    %42 = arith.addi %18, %41 : vector<32x1xi32>
    %c0_i32_17 = arith.constant 0 : i32
    %43 = vector.broadcast %c0_i32_17 : i32 to vector<32x1xi32>
    %44 = arith.cmpi sge, %42, %43 : vector<32x1xi32>
    %c1_i32_18 = arith.constant 1 : i32
    %45 = vector.broadcast %c1_i32_18 : i32 to vector<32x1xi32>
    %46 = arith.addi %18, %45 : vector<32x1xi32>
    %c16_i32_19 = arith.constant 16 : i32
    %47 = vector.broadcast %c16_i32_19 : i32 to vector<32x1xi32>
    %48 = arith.cmpi slt, %46, %47 : vector<32x1xi32>
    %49 = arith.andi %44, %48 : vector<32x1xi1>
    %cst_20 = arith.constant 0.000000e+00 : f32
    %50 = vector.shape_cast %49 : vector<32x1xi1> to vector<32x1xi1>
    %51 = vector.broadcast %50 : vector<32x1xi1> to vector<32x32xi1>
    %52 = vector.broadcast %cst_20 : f32 to vector<32x32xf32>
    %53 = arith.select %51, %40, %52 : vector<32x32xi1>, vector<32x32xf32>
    %c2 = arith.constant 2 : index
    %c0_21 = arith.constant 0 : index
    %c0_22 = arith.constant 0 : index
    %54 = vector.load %arg2[%c2, %c0_21, %c0_22] : memref<3x32x32xf32, #tpu.memory_space<vmem>>, vector<1x32x32xf32>
    %55 = vector.shape_cast %54 : vector<1x32x32xf32> to vector<32x32xf32>
    %cst_23 = arith.constant dense<0.000000e+00> : vector<32x32xf32>
    %56 = tpu.matmul %53, %55, %cst_23 {dimension_numbers = #tpu.dot_dimension_numbers<[1], [0], [0], [1], [0, 0, 1, 1], [], []>} : vector<32x32xf32>, vector<32x32xf32>, vector<32x32xf32> -> vector<32x32xf32>
    %57 = arith.addf %39, %56 : vector<32x32xf32>
    %c0_24 = arith.constant 0 : index
    %c0_25 = arith.constant 0 : index
    %58 = vector.load %arg4[%c0_24, %c0_25] : memref<1x32xf32, #tpu.memory_space<vmem>>, vector<1x32xf32>
    %59 = vector.broadcast %58 : vector<1x32xf32> to vector<32x32xf32>
    %60 = arith.mulf %57, %59 : vector<32x32xf32>
    %c0_26 = arith.constant 0 : index
    %c0_27 = arith.constant 0 : index
    %61 = vector.load %arg5[%c0_26, %c0_27] : memref<1x32xf32, #tpu.memory_space<vmem>>, vector<1x32xf32>
    %62 = vector.broadcast %61 : vector<1x32xf32> to vector<32x32xf32>
    %63 = arith.addf %60, %62 : vector<32x32xf32>
    %cst_28 = arith.constant 0.000000e+00 : f32
    %64 = vector.broadcast %cst_28 : f32 to vector<32x32xf32>
    %65 = arith.maximumf %63, %64 : vector<32x32xf32>
    %c1_29 = arith.constant 1 : index
    %c0_30 = arith.constant 0 : index
    %c0_31 = arith.constant 0 : index
    %66 = vector.load %arg3[%c1_29, %c0_30, %c0_31] : memref<3x32x32xf32, #tpu.memory_space<vmem>>, vector<1x32x32xf32>
    %67 = vector.shape_cast %66 : vector<1x32x32xf32> to vector<32x32xf32>
    %cst_32 = arith.constant dense<0.000000e+00> : vector<32x32xf32>
    %68 = tpu.matmul %65, %67, %cst_32 {dimension_numbers = #tpu.dot_dimension_numbers<[1], [0], [0], [1], [0, 0, 1, 1], [], []>} : vector<32x32xf32>, vector<32x32xf32>, vector<32x32xf32> -> vector<32x32xf32>
    %c1_i32_33 = arith.constant 1 : i32
    %69 = tpu.dynamic_rotate %65 by %c1_i32_33 dim 0 : vector<32x32xf32>, i32 -> vector<32x32xf32>
    %c-1_i32_34 = arith.constant -1 : i32
    %70 = vector.broadcast %c-1_i32_34 : i32 to vector<32x1xi32>
    %71 = arith.addi %18, %70 : vector<32x1xi32>
    %c0_i32_35 = arith.constant 0 : i32
    %72 = vector.broadcast %c0_i32_35 : i32 to vector<32x1xi32>
    %73 = arith.cmpi sge, %71, %72 : vector<32x1xi32>
    %c-1_i32_36 = arith.constant -1 : i32
    %74 = vector.broadcast %c-1_i32_36 : i32 to vector<32x1xi32>
    %75 = arith.addi %18, %74 : vector<32x1xi32>
    %c16_i32_37 = arith.constant 16 : i32
    %76 = vector.broadcast %c16_i32_37 : i32 to vector<32x1xi32>
    %77 = arith.cmpi slt, %75, %76 : vector<32x1xi32>
    %78 = arith.andi %73, %77 : vector<32x1xi1>
    %cst_38 = arith.constant 0.000000e+00 : f32
    %79 = vector.shape_cast %78 : vector<32x1xi1> to vector<32x1xi1>
    %80 = vector.broadcast %79 : vector<32x1xi1> to vector<32x32xi1>
    %81 = vector.broadcast %cst_38 : f32 to vector<32x32xf32>
    %82 = arith.select %80, %69, %81 : vector<32x32xi1>, vector<32x32xf32>
    %c0_39 = arith.constant 0 : index
    %c0_40 = arith.constant 0 : index
    %c0_41 = arith.constant 0 : index
    %83 = vector.load %arg3[%c0_39, %c0_40, %c0_41] : memref<3x32x32xf32, #tpu.memory_space<vmem>>, vector<1x32x32xf32>
    %84 = vector.shape_cast %83 : vector<1x32x32xf32> to vector<32x32xf32>
    %cst_42 = arith.constant dense<0.000000e+00> : vector<32x32xf32>
    %85 = tpu.matmul %82, %84, %cst_42 {dimension_numbers = #tpu.dot_dimension_numbers<[1], [0], [0], [1], [0, 0, 1, 1], [], []>} : vector<32x32xf32>, vector<32x32xf32>, vector<32x32xf32> -> vector<32x32xf32>
    %86 = arith.addf %68, %85 : vector<32x32xf32>
    %c31_i32_43 = arith.constant 31 : i32
    %87 = tpu.dynamic_rotate %65 by %c31_i32_43 dim 0 : vector<32x32xf32>, i32 -> vector<32x32xf32>
    %c1_i32_44 = arith.constant 1 : i32
    %88 = vector.broadcast %c1_i32_44 : i32 to vector<32x1xi32>
    %89 = arith.addi %18, %88 : vector<32x1xi32>
    %c0_i32_45 = arith.constant 0 : i32
    %90 = vector.broadcast %c0_i32_45 : i32 to vector<32x1xi32>
    %91 = arith.cmpi sge, %89, %90 : vector<32x1xi32>
    %c1_i32_46 = arith.constant 1 : i32
    %92 = vector.broadcast %c1_i32_46 : i32 to vector<32x1xi32>
    %93 = arith.addi %18, %92 : vector<32x1xi32>
    %c16_i32_47 = arith.constant 16 : i32
    %94 = vector.broadcast %c16_i32_47 : i32 to vector<32x1xi32>
    %95 = arith.cmpi slt, %93, %94 : vector<32x1xi32>
    %96 = arith.andi %91, %95 : vector<32x1xi1>
    %cst_48 = arith.constant 0.000000e+00 : f32
    %97 = vector.shape_cast %96 : vector<32x1xi1> to vector<32x1xi1>
    %98 = vector.broadcast %97 : vector<32x1xi1> to vector<32x32xi1>
    %99 = vector.broadcast %cst_48 : f32 to vector<32x32xf32>
    %100 = arith.select %98, %87, %99 : vector<32x32xi1>, vector<32x32xf32>
    %c2_49 = arith.constant 2 : index
    %c0_50 = arith.constant 0 : index
    %c0_51 = arith.constant 0 : index
    %101 = vector.load %arg3[%c2_49, %c0_50, %c0_51] : memref<3x32x32xf32, #tpu.memory_space<vmem>>, vector<1x32x32xf32>
    %102 = vector.shape_cast %101 : vector<1x32x32xf32> to vector<32x32xf32>
    %cst_52 = arith.constant dense<0.000000e+00> : vector<32x32xf32>
    %103 = tpu.matmul %100, %102, %cst_52 {dimension_numbers = #tpu.dot_dimension_numbers<[1], [0], [0], [1], [0, 0, 1, 1], [], []>} : vector<32x32xf32>, vector<32x32xf32>, vector<32x32xf32> -> vector<32x32xf32>
    %104 = arith.addf %86, %103 : vector<32x32xf32>
    %c0_53 = arith.constant 0 : index
    %c0_54 = arith.constant 0 : index
    %105 = vector.load %arg6[%c0_53, %c0_54] : memref<1x32xf32, #tpu.memory_space<vmem>>, vector<1x32xf32>
    %106 = vector.broadcast %105 : vector<1x32xf32> to vector<32x32xf32>
    %107 = arith.mulf %104, %106 : vector<32x32xf32>
    %c0_55 = arith.constant 0 : index
    %c0_56 = arith.constant 0 : index
    %108 = vector.load %arg7[%c0_55, %c0_56] : memref<1x32xf32, #tpu.memory_space<vmem>>, vector<1x32xf32>
    %109 = vector.broadcast %108 : vector<1x32xf32> to vector<32x32xf32>
    %110 = arith.addf %107, %109 : vector<32x32xf32>
    %111 = arith.addf %110, %1 : vector<32x32xf32>
    %cst_57 = arith.constant 0.000000e+00 : f32
    %112 = vector.broadcast %cst_57 : f32 to vector<32x32xf32>
    %113 = arith.maximumf %111, %112 : vector<32x32xf32>
    %114 = vector.shape_cast %113 : vector<32x32xf32> to vector<2x16x32xf32>
    %c0_58 = arith.constant 0 : index
    %c0_59 = arith.constant 0 : index
    %c0_60 = arith.constant 0 : index
    %115 = vector.load %arg8[%c0_58, %c0_59, %c0_60] : memref<2x16x32xf32, #tpu.memory_space<vmem>>, vector<2x16x32xf32>
    tpu.vector_store %arg8[%c0_58, %c0_59, %c0_60], %114 {strides = array<i32>} : memref<2x16x32xf32, #tpu.memory_space<vmem>>, vector<2x16x32xf32>,
    return
  }
  func.func @transform_0(%arg0: i32) -> (i32, i32, i32) {
    %c0_i32 = arith.constant 0 : i32
    %c0_i32_0 = arith.constant 0 : i32
    %c0_i32_1 = arith.constant 0 : i32
    return %arg0, %c0_i32, %c0_i32_0 : i32, i32, i32
  }
  func.func @transform_1(%arg0: i32) -> (i32, i32, i32) {
    %c0_i32 = arith.constant 0 : i32
    %c0_i32_0 = arith.constant 0 : i32
    %c0_i32_1 = arith.constant 0 : i32
    %c0_i32_2 = arith.constant 0 : i32
    return %c0_i32, %c0_i32_0, %c0_i32_1 : i32, i32, i32
  }
  func.func @transform_2(%arg0: i32) -> (i32, i32, i32) {
    %c0_i32 = arith.constant 0 : i32
    %c0_i32_0 = arith.constant 0 : i32
    %c0_i32_1 = arith.constant 0 : i32
    %c0_i32_2 = arith.constant 0 : i32
    return %c0_i32, %c0_i32_0, %c0_i32_1 : i32, i32, i32
  }
  func.func @transform_3(%arg0: i32) -> (i32, i32) {
    %c0_i32 = arith.constant 0 : i32
    %c0_i32_0 = arith.constant 0 : i32
    %c0_i32_1 = arith.constant 0 : i32
    return %c0_i32, %c0_i32_0 : i32, i32
  }
  func.func @transform_4(%arg0: i32) -> (i32, i32) {
    %c0_i32 = arith.constant 0 : i32
    %c0_i32_0 = arith.constant 0 : i32
    %c0_i32_1 = arith.constant 0 : i32
    return %c0_i32, %c0_i32_0 : i32, i32
  }
  func.func @transform_5(%arg0: i32) -> (i32, i32) {
    %c0_i32 = arith.constant 0 : i32
    %c0_i32_0 = arith.constant 0 : i32
    %c0_i32_1 = arith.constant 0 : i32
    return %c0_i32, %c0_i32_0 : i32, i32
  }
  func.func @transform_6(%arg0: i32) -> (i32, i32) {
    %c0_i32 = arith.constant 0 : i32
    %c0_i32_0 = arith.constant 0 : i32
    %c0_i32_1 = arith.constant 0 : i32
    return %c0_i32, %c0_i32_0 : i32, i32
  }
  func.func @transform_7(%arg0: i32) -> (i32, i32, i32) {
    %c0_i32 = arith.constant 0 : i32
    %c0_i32_0 = arith.constant 0 : i32
    %c0_i32_1 = arith.constant 0 : i32
    return %arg0, %c0_i32, %c0_i32_0 : i32, i32, i32
  }
}

</mosaic_0001>

<bundles_post_ra>
// kernel: tpu_custom_call.1
= control target key start
LH: loop header
LB: loop body
LE: loop exit
PB: predicated region body
PF: predicated region fallthrough
CT: control target
= control target key end

     0   :  { %s1568_s0 = inlined_call_operand.hbm [shape: f32[4,16,32], index: 0, kind: input, shape index: {}]   ;;  %s1569_s1 = inlined_call_operand.hbm [shape: f32[3,32,32], index: 1, kind: input, shape index: {}]   ;;  %s1570_s2 = inlined_call_operand.hbm [shape: f32[3,32,32], index: 2, kind: input, shape index: {}]   ;;  %s1571_s3 = inlined_call_operand.vmem [shape: f32[1,32], index: 3, kind: input, shape index: {}]   ;;  %s1572_s4 = inlined_call_operand.vmem [shape: f32[1,32], index: 4, kind: input, shape index: {}]   ;;  %s1573_s5 = inlined_call_operand.vmem [shape: f32[1,32], index: 5, kind: input, shape index: {}]   ;;  %s1574_s6 = inlined_call_operand.vmem [shape: f32[1,32], index: 6, kind: input, shape index: {}]   ;;  %s1575_s7 = inlined_call_operand.hbm [shape: f32[4,16,32], index: 7, kind: output, shape index: {}]  }
   0x1   :  { %1578 = sst [smem:[#allocation12_spill]] %s1569_s1 }
   0x2   :  { %12 = vsyncpa [#allocation3], 0 }
   0x3   :  { %14 = vsyncpa [#allocation3 + $0x1], 0 }
   0x4   :  { %15 = vsyncpa [#allocation6], 0 }
   0x5   :  { %16 = vsyncpa [#allocation4], 0 }
   0x6   :  { %18 = vsyncpa [#allocation4 + $0x1], 0  ;;  %s1269_s24 = smov 0   ;;  %s1271_s25 = smov 0  }
   0x7   :  { %s1273_s26 = smov 0   ;;  %s1275_s27 = smov 0  }
   0x8 LB: > { %s1290_s28 = sadd.s32 4294967295, %s1221_s27   ;;  %s930_s29 = sadd.s32 4294967294, %s1221_s27   ;;  %s1221_s27 = sphi %s1275_s27, %s1591_s27   ;;  %s1217_s26 = sphi %s1273_s26, %s1590_s26   ;;  %s1213_s25 = sphi %s1271_s25, %s1589_s25   ;;  %s1209_s24 = sphi %s1269_s24, %s1588_s24  }
   0x9   : > { %p44_p0 = scmp.ne.s32.totalorder %s1213_s25, %s1209_s24  ;;  %p45_p1 = scmp.eq.s32.totalorder %s1290_s28, 0 }
   0xa   : > { %p194_p2 = scmp.eq.s32.totalorder %s1290_s28, 1  ;;  %p200_p3 = scmp.eq.s32.totalorder %s930_s29, 1 }
   0xb   : > { %p1299_p4 = por %p45_p1, %p44_p0  ;;  %p931_p5 = scmp.ge.s32.totalorder %s1221_s27, 1 }
   0xc   : > { %p1304_p6 = por %p200_p3, %p44_p0  ;;  %p207_p7 = scmp.lt.s32.totalorder %s1221_s27, 3 }
   0xd   : > { %s1581_s1 = sld [smem:[#allocation12_spill]]  ;;  %s1223_s13 = smov [#allocation5]  }
   0xe   : > { %p1312_p8 = pnand %p931_p5, %p207_p7  ;;  %s220_s14 = sshll.u32 %s1223_s13, 4  ;;  %s221_s14 = int_to_ptr.vmem [resolvable:$true] %s220_s14 }
   0xf   : > { %s232_s17 = sshll.u32 %s1570_s2, 4  ;;  %s1576_s18 = smov 128   ;;  %s233_s17 = int_to_ptr.hbm [resolvable:$true] %s232_s17 }
  0x10   : > { %p998_p9 = pneg %p1312_p8  ;;  %s1577_s19 = smov 8  }
  0x11   : > { %s1226_s20 = smov [#allocation7]   ;;  %s1331_s22 = sadd.s32 1, %s1221_s27  }
  0x12   : > { %p999_p10 = pnand %p998_p9, %p45_p1  ;;  %s234_s21 = sshll.u32 %s1226_s20, 4  ;;  %s235_s21 = int_to_ptr.vmem [resolvable:$true] %s234_s21 }
  0x13   : > { %s218_s11 = sshll.u32 %s1581_s1, 4  ;;  %s31_s23 = sadd.s32 1, %s1217_s26  ;;  %s219_s11 = int_to_ptr.hbm [resolvable:$true] %s218_s11 }
  0x14   : > { %1001 = dma.hbm_to_vmem [thread:$0]  (!%p999_p10), %s219_s11, 1536, %s221_s14, [#allocation6], %s1576_s18, %s1576_s18, %s1577_s19  }
  0x15   : > { %1004 = dma.hbm_to_vmem [thread:$0]  (!%p999_p10), %s233_s17, 1536, %s235_s21, [#allocation6], %s1576_s18, %s1576_s18, %s1577_s19  }
  0x16   : > { %s28_s29 = ssub.s32 %s1221_s27, %s1331_s22  ;;  %p38_p12 = scmp.ne.s32.totalorder %s1217_s26, %s1213_s25 }
  0x17   : > { %p29_p13 = scmp.eq.s32.totalorder %s28_s29, 0  ;;  %p39_p0 = scmp.eq.s32.totalorder %s1221_s27, 0 }
  0x18   : > { %p1341_p3 = por %p194_p2, %p38_p12  ;;  %p1015_p5 = scmp.lt.s32.totalorder %s1221_s27, 2 }
  0x19   : > { %s1347_s10 = scalar_select %p29_p13, %s1217_s26, %s31_s23  }
  0x1a   : > { %p40_p7 = por %p39_p0, %p38_p12  ;;  %s260_s11 = sand.u32 1, %s1217_s26  }
  0x1b   : > { %s935_s13 = sshll.u32 %s260_s11, 5  ;;  %s975_s14 = sshll.u32 %s1221_s27, 5 }
  0x1c   : > { %s270_s17 = scalar_lea.hbm %s1568_s0, %s975_s14  ;;  %s264_s20 = scalar_lea.vmem [#allocation2], %s935_s13 }
  0x1d   : > { %s273_s21 = sshll.u32 %s264_s20, 4  ;;  %s271_s29 = sshll.u32 %s270_s17, 4  ;;  %s274_s21 = int_to_ptr.vmem [resolvable:$true] %s273_s21  ;;  %s272_s29 = int_to_ptr.hbm [resolvable:$true] %s271_s29 }
  0x1e   : > { %p1354_p2 = pnand %p1015_p5, %p40_p7  ;;  %s261_s23 = scalar_lea.sflag [#allocation3], %s260_s11 }
  0x1f   : > { %s1121_s19 = sshra.s32 %s272_s29, 4  ;;  %s1128_s15 = scalar_lea.hbm %s1568_s0, 64  ;;  %s1122_s19 = int_to_ptr.hbm [resolvable:$true] %s1121_s19 }
  0x20   : > { %s1123_s1 = scalar_lea.hbm %s1122_s19, 32  ;;  %p1125_p10 = pneg %p1354_p2 }
  0x21   : > { %p1124_p9 = scmp.ne.s32.totalorder %s1122_s19, %s1123_s1  ;;  %p1129_p0 = scmp.lt.s32.totalorder %s1122_s19, %s1568_s0 }
  0x22   : > { %p1130_p5 = scmp.lt.s32.totalorder %s1128_s15, %s1123_s1 }
  0x23   : > { %p1126_p12 = pnand %p1125_p10, %p1124_p9 }
  0x24   : > { %p1131_p7 = por %p1130_p5, %p1129_p0 }
  0x25   : > { %p1127_p13 = pneg %p1126_p12 }
  0x27   : > { %p1132_p11 = pnand %p1131_p7, %p1127_p13 }
  0x29   : > { %1135 = shalt.err (!%p1132_p11)
}
  0x2a   : > { %s1585_s11 = smov 8   ;;  %s1586_s20 = smov 128  }
  0x2b   : > { %1008 = dma.hbm_to_vmem [thread:$0]  (!%p1354_p2), %s272_s29, 512, %s274_s21, %s261_s23, %s1586_s20, %s1586_s20, %s1585_s11  }
  0x2c   : > { %285 = sbr.rel (%p1312_p8) target bundleno = 420 (0x1a4), region = 48  ;;  %s1374_s14 = sand.u32 (!%p1312_p8), 1, %s1213_s25  }
  0x2d   : > { %s940_s1 = sshll.u32 (!%p1312_p8), %s1374_s14, 5  ;;  %s288_s19 = scalar_lea.sflag (!%p1312_p8), [#allocation3], %s1374_s14 }
  0x2e   : > { %s1380_s13 = scalar_lea.vmem (!%p1312_p8), [#allocation2], %s940_s1 }
  0x31   : > { %1196 = dma.done.wait (%p1299_p4), %s288_s19, 512  }
  0x32   : > { %1198 = vsyncadd (%p1299_p4), %s288_s19, 4294966784 }
  0x33   : > { %1200 = dma.done.wait (%p45_p1), [#allocation6], 3072  }
  0x34   : > { %1202 = vsyncadd (%p45_p1), [#allocation6], 4294964224  ;;  %v339_v0 = vlaneseq  ;;  %v437_v5 = vld [vmem:[#allocation5 + $0x18] sm:$0xff]  ;;  %v436_v7 = vld [vmem:[#allocation5 + $0x10] sm:$0xff]  ;;  %vm438_vm2 = vcmask 261120   ;;  %s1521_s17 = scalar_lea.vmem [#allocation8], %s940_s1 }
  0x35   : > { %v396_v6 = vld [vmem:[#allocation5 + $0x38] sm:$0xff]  ;;  %978 = vmatpush.msra.mxu2 %v437_v5  ;;  %v395_v8 = vld [vmem:[#allocation5 + $0x30] sm:$0xff]  ;;  %v435_v11 = vld [vmem:[#allocation5 + $0x8] sm:$0xff]  ;;  %463 = vmatpush.msra.mxu0 %v437_v5  ;;  %s977_s11 = sshll.u32 %s1290_s28, 5  ;;  %s822_s28 = scalar_lea.sflag [#allocation4], %s1374_s14 }
  0x36   : > { %v1390_v1 = vshrl.u32 %v339_v0, 7  ;;  %982 = vmatpush.msra.mxu3 %v396_v6  ;;  %v394_v12 = vld [vmem:[#allocation5 + $0x28] sm:$0xff]  ;;  %504 = vmatpush.msra.mxu1 %v396_v6  ;;  %v1402_v14 = vld [vmem:[%s1380_s13 + $0x10] sm:$0xff]  ;;  %v434_v16 = vld [vmem:[#allocation5] sm:$0xff]  ;;  %s834_s19 = scalar_lea.hbm %s1575_s7, %s977_s11  ;;  %s1171_s23 = scalar_lea.hbm %s1575_s7, 64 }
  0x37   : > { %v1399_v13 = vld [vmem:[%s1380_s13 + $0x8] sm:$0xff]  ;;  %979 = vmatpush.msra.mxu2 %v436_v7  ;;  %v393_v17 = vld [vmem:[#allocation5 + $0x20] sm:$0xff]  ;;  %v399_v18 = vrot.slane %v1402_v14, 7  ;;  %v1409_v19 = vld [vmem:[%s1380_s13 + $0x18] sm:$0xff]  ;;  %464 = vmatpush.msra.mxu0 %v436_v7  ;;  %v523_v38 = vrot.slane %v1402_v14, 1  ;;  %s837_s30 = sshll.u32 %s834_s19, 4  ;;  %s838_s30 = int_to_ptr.hbm [resolvable:$true] %s837_s30 }
  0x38   : > { %v342_v2 = vadd.s32 16, %v1390_v1  ;;  %v348_v3 = vand.u32 15, %v1390_v1  ;;  %983 = vmatpush.msra.mxu3 %v395_v8  ;;  %v398_v15 = vrot.slane %v1399_v13, 7  ;;  %vm401_vm0 = vcmp.lt.s32.totalorder %v1390_v1, 1  ;;  %505 = vmatpush.msra.mxu1 %v395_v8  ;;  %v562_v20 = vld [vmem:[#allocation5 + $0x58] sm:$0xff]  ;;  %v1412_v21 = vld [vmem:[%s1380_s13] sm:$0xff] }
  0x39   : > { %980 = vmatpush.msra.mxu2 %v435_v11  ;;  %v400_v23 = vrot.slane %v1409_v19, 7  ;;  %465 = vmatpush.msra.mxu0 %v435_v11  ;;  %v397_v24 = vrot.slane %v1412_v21, 7  ;;  %v561_v26 = vld [vmem:[#allocation5 + $0x50] sm:$0xff]  ;;  %v560_v29 = vld [vmem:[#allocation5 + $0x48] sm:$0xff]  ;;  %v559_v30 = vld [vmem:[#allocation5 + $0x40] sm:$0xff]  ;;  %v341_v32 = vadd.s32 8, %v1390_v1 }
  0x3a   : > { %v362_v4 = vand.u32 15, %v342_v2  ;;  %v1396_v10 = vadd.s32 4294967295, %v348_v3  ;;  %984 = vmatpush.msra.mxu3 %v394_v12  ;;  %v403_v22 = vsel %vm401_vm0, %v398_v15, %v399_v18  ;;  %506 = vmatpush.msra.mxu1 %v394_v12  ;;  %v521_v34 = vrot.slane %v1412_v21, 1  ;;  %v632_v49 = vld [vmem:[#allocation7 + $0x38] sm:$0xff]  ;;  %v631_v50 = vld [vmem:[#allocation7 + $0x30] sm:$0xff]  ;;  %v630_v51 = vld [vmem:[#allocation7 + $0x28] sm:$0xff] }
  0x3b   : > { %981 = vmatpush.msra.mxu2 %v434_v16  ;;  %v405_v27 = vsel %vm401_vm0, %v400_v23, %v397_v24  ;;  %466 = vmatpush.msra.mxu0 %v434_v16  ;;  %v402_v31 = vsel %vm401_vm0, %v399_v18, %v400_v23  ;;  %v404_v33 = vsel %vm401_vm0, %v397_v24, %v398_v15  ;;  %v522_v35 = vrot.slane %v1399_v13, 1  ;;  %v629_v52 = vld [vmem:[#allocation7 + $0x20] sm:$0xff]  ;;  %v747_v53 = vld [vmem:[#allocation7 + $0x58] sm:$0xff]  ;;  %v746_v54 = vld [vmem:[#allocation7 + $0x50] sm:$0xff]  ;;  %s835_s13 = sshll.u32 %s1521_s17, 4  ;;  %s1165_s12 = sshra.s32 %s838_s30, 4  ;;  %s836_s13 = int_to_ptr.vmem [resolvable:$true] %s835_s13  ;;  %s1166_s12 = int_to_ptr.hbm [resolvable:$true] %s1165_s12 }
  0x3c   : > { %v1394_v9 = vadd.s32 4294967295, %v362_v4  ;;  %vm410_vm3 = vcmp.ge.s32.totalorder %v1396_v10, 0  ;;  %985 = vmatpush.msra.mxu3 %v393_v17  ;;  %507 = vmatpush.msra.mxu1 %v393_v17  ;;  %vm525_vm4 = vcmp.lt.s32.totalorder %v1390_v1, 7  ;;  %v355_v36 = vand.u32 15, %v341_v32  ;;  %v745_v56 = vld [vmem:[#allocation7 + $0x48] sm:$0xff]  ;;  %v744_v57 = vld [vmem:[#allocation7 + $0x40] sm:$0xff]  ;;  %p1172_p11 = scmp.lt.s32.totalorder %s1166_s12, %s1575_s7 }
  0x3d   : > { %950 = vmatmul.msk.f32.vlgmr.msra.gmra.mxu3 %vm438_vm2, %v1402_v14  ;;  %587 = vmatpush.msrb.mxu2 %v562_v20  ;;  %v430_v28 = vsel %vm410_vm3, %v405_v27, 0.0  ;;  %v528_v37 = vsel %vm525_vm4, %v521_v34, %v522_v35  ;;  %v527_v40 = vsel %vm525_vm4, %v522_v35, %v523_v38  ;;  %v343_v42 = vadd.s32 24, %v1390_v1  ;;  %v648_v58 = vld [vmem:[#allocation7 + $0x18] sm:$0xff]  ;;  %v647_v62 = vld [vmem:[#allocation7 + $0x10] sm:$0xff]  ;;  %v646_v63 = vld [vmem:[#allocation7 + $0x8] sm:$0xff]  ;;  %s1167_s18 = scalar_lea.hbm %s1166_s12, 32 }
  0x3e   : > { %vm412_vm1 = vcmp.ge.s32.totalorder %v1394_v9, 0  ;;  %944 = vmatmul.msk.f32.vlgmr.msra.gmra.mxu0 %vm438_vm2, %v430_v28  ;;  %948 = vmatmul.msk.f32.vlgmr.msra.gmra.mxu1 %vm438_vm2, %v1412_v21  ;;  %v1448_v39 = vadd.s32 1, %v355_v36  ;;  %v524_v43 = vrot.slane %v1409_v19, 1  ;;  %v645_v2 = vld [vmem:[#allocation7] sm:$0xff]  ;;  %p1168_p1 = scmp.ne.s32.totalorder %s1166_s12, %s1167_s18  ;;  %p1173_p2 = scmp.lt.s32.totalorder %s1171_s23, %s1167_s18 }
  0x3f   : > { %v432_v25 = vsel %vm412_vm1, %v403_v22, 0.0  ;;  %588 = vmatpush.msrb.mxu2 %v561_v26  ;;  %v369_v44 = vand.u32 15, %v343_v42  ;;  %714 = vmatpush.msrb.mxu0 %v632_v49  ;;  %v1057_v3 = vld [vmem:[%s1571_s3] ss:$0 sm:$0xff] }
  0x40   : > { %946 = vmatmul.msk.f32.vlgmr.msra.gmra.mxu2 %vm438_vm2, %v432_v25  ;;  %vm539_vm5 = vcmp.lt.s32.totalorder %v1448_v39, 16  ;;  %v526_v45 = vsel %vm525_vm4, %v523_v38, %v524_v43  ;;  %v529_v47 = vsel %vm525_vm4, %v524_v43, %v521_v34  ;;  %772 = vmatpush.msrb.mxu1 %v747_v53  ;;  %v1058_v6 = vld [vmem:[%s1572_s4] ss:$0 sm:$0xff]  ;;  %p1169_p4 = pnand %p1168_p1, %p1341_p3  ;;  %p1174_p9 = por %p1173_p2, %p1172_p11 }
  0x41   : > { %589 = vmatpush.msrb.mxu2 %v560_v29  ;;  %v555_v41 = vsel %vm539_vm5, %v527_v40, 0.0  ;;  %v1461_v46 = vadd.s32 1, %v369_v44  ;;  %715 = vmatpush.msrb.mxu0 %v631_v50  ;;  %v1060_v9 = vld [vmem:[%s1574_s6] ss:$0 sm:$0xff] }
  0x42   : > { %773 = vmatpush.msrb.mxu1 %v746_v54  ;;  %673 = vmatpush.msrb.mxu3 %v648_v58  ;;  %p1170_p8 = pneg %p1169_p4 }
  0x43   : > { %590 = vmatpush.msrb.mxu2 %v559_v30  ;;  %vm541_vm6 = vcmp.lt.s32.totalorder %v1461_v46, 16  ;;  %716 = vmatpush.msrb.mxu0 %v630_v51 }
  0x44   : > { %v557_v48 = vsel %vm541_vm6, %v529_v47, 0.0  ;;  %774 = vmatpush.msrb.mxu1 %v745_v56  ;;  %674 = vmatpush.msrb.mxu3 %v647_v62  ;;  %p1175_p10 = pnand %p1174_p9, %p1170_p8 }
  0x45   : > { %951 = vmatmul.msk.f32.gmra.mxu3 %vm438_vm2, %v1409_v19  ;;  %717 = vmatpush.msrb.mxu0 %v629_v52 }
  0x46   : > { %945 = vmatmul.msk.f32.gmra.mxu0 %vm438_vm2, %v404_v33  ;;  %949 = vmatmul.msk.f32.gmra.mxu1 %vm438_vm2, %v1399_v13 }
  0x47   : > { %775 = vmatpush.msrb.mxu1 %v744_v57  ;;  %675 = vmatpush.msrb.mxu3 %v646_v63 }
  0x48   : > { %947 = vmatmul.msk.f32.gmra.mxu2 %vm438_vm2, %v402_v31 }
  0x49   : > { %676 = vmatpush.msrb.mxu3 %v645_v2 }
  0x50   : > { %952 = vmatmul.msk.f32.vlgmr.msrb.gmra.mxu2 %vm438_vm2, %v528_v37 }
  0x58   : > { %953 = vmatmul.msk.f32.gmra.mxu2 %vm438_vm2, %v555_v41 }
  0x60   : > { %954 = vmatmul.msk.f32.gmra.mxu2 %vm438_vm2, %v526_v45 }
  0x68   : > { %955 = vmatmul.msk.f32.gmra.mxu2 %vm438_vm2, %v557_v48 }
  0xbb   : > { %v468_v59 = vpop.f32.mrf.mxu0  ;;  %v509_v61 = vpop.f32.mrf.mxu1 }
  0xbc   : > { %v510_v0 = vadd.f32 %v509_v61, %v468_v59  ;;  %v1059_v61 = vld [vmem:[%s1573_s5] ss:$0 sm:$0xff] }
  0xc0   : > { %v515_v20 = vpop.f32.mrf.mxu3 }
  0xc3   : > { %v474_v55 = vpop.f32.mrf.mxu2  ;;  %v471_v7 = vpop.f32.mrf.mxu0 }
  0xc4   : > { %v512_v8 = vpop.f32.mrf.mxu1  ;;  %v516_v24 = vadd.f32 %v515_v20, %v474_v55 }
  0xc5   : > { %v513_v15 = vadd.f32 %v512_v8, %v471_v7 }
  0xc8   : > { %v518_v32 = vpop.f32.mrf.mxu3 }
  0xcb   : > { %v477_v60 = vpop.f32.mrf.mxu2 }
  0xcc   : > { %v519_v34 = vadd.f32 %v518_v32, %v477_v60 }
  0xd3   : > { %v592_v4 = vpop.f32.mrf.mxu2 }
  0xd4   : > { %v604_v5 = vadd.f32 %v592_v4, %v510_v0 }
  0xd6   : > { %v612_v11 = vmul.f32 %v1057_v3, %v604_v5 }
  0xd8   : > { %v620_v12 = vadd.f32 %v1058_v6, %v612_v11 }
  0xda   : > { %v624_v16 = vmax.f32 %v620_v12, 0.0 }
  0xdb   : > { %v595_v17 = vpop.f32.mrf.mxu2 }
  0xdc   : > { %v605_v18 = vadd.f32 %v595_v17, %v513_v15  ;;  %960 = vmatmul.msk.f32.vlgmr.msrb.gmra.mxu0 %vm438_vm2, %v624_v16  ;;  %v731_v28 = vrot.slane %v624_v16, 1  ;;  %v633_v47 = vrot.slane %v624_v16, 7 }
  0xde   : > { %v613_v22 = vmul.f32 %v1057_v3, %v605_v18 }
  0xe0   : > { %v621_v23 = vadd.f32 %v1058_v6, %v613_v22 }
  0xe2   : > { %v625_v25 = vmax.f32 %v621_v23, 0.0 }
  0xe3   : > { %v598_v26 = vpop.f32.mrf.mxu2 }
  0xe4   : > { %v606_v27 = vadd.f32 %v598_v26, %v516_v24  ;;  %961 = vmatmul.msk.f32.gmra.mxu0 %vm438_vm2, %v625_v25  ;;  %v732_v29 = vrot.slane %v625_v25, 1  ;;  %v634_v39 = vrot.slane %v625_v25, 7 }
  0xe6   : > { %v614_v30 = vmul.f32 %v1057_v3, %v606_v27  ;;  %v737_v31 = vsel %vm525_vm4, %v731_v28, %v732_v29  ;;  %v639_v53 = vsel %vm401_vm0, %v633_v47, %v634_v39 }
  0xe7   : > { %964 = vmatmul.msk.f32.vlgmr.msrb.gmra.mxu1 %vm438_vm2, %v737_v31 }
  0xe8   : > { %v622_v33 = vadd.f32 %v1058_v6, %v614_v30 }
  0xea   : > { %v626_v35 = vmax.f32 %v622_v33, 0.0 }
  0xeb   : > { %v601_v36 = vpop.f32.mrf.mxu2 }
  0xec   : > { %v607_v37 = vadd.f32 %v601_v36, %v519_v34  ;;  %962 = vmatmul.msk.f32.gmra.mxu0 %vm438_vm2, %v626_v35  ;;  %v733_v38 = vrot.slane %v626_v35, 1  ;;  %v635_v10 = vrot.slane %v626_v35, 7 }
  0xee   : > { %v615_v40 = vmul.f32 %v1057_v3, %v607_v37  ;;  %v736_v41 = vsel %vm525_vm4, %v732_v29, %v733_v38  ;;  %v638_v55 = vsel %vm401_vm0, %v634_v39, %v635_v10 }
  0xef   : > { %v740_v42 = vsel %vm539_vm5, %v736_v41, 0.0  ;;  %v643_v56 = vsel %vm412_vm1, %v638_v55, 0.0 }
  0xf0   : > { %965 = vmatmul.msk.f32.gmra.mxu1 %vm438_vm2, %v740_v42  ;;  %v623_v43 = vadd.f32 %v1058_v6, %v615_v40 }
  0xf2   : > { %v627_v44 = vmax.f32 %v623_v43, 0.0 }
  0xf4   : > { %v636_v45 = vrot.slane %v627_v44, 7  ;;  %963 = vmatmul.msk.f32.gmra.mxu0 %vm438_vm2, %v627_v44  ;;  %v734_v48 = vrot.slane %v627_v44, 1 }
  0xf6   : > { %v640_v49 = vsel %vm401_vm0, %v636_v45, %v633_v47  ;;  %v735_v50 = vsel %vm525_vm4, %v733_v38, %v734_v48  ;;  %v738_v52 = vsel %vm525_vm4, %v734_v48, %v731_v28  ;;  %v637_v57 = vsel %vm401_vm0, %v635_v10, %v636_v45 }
  0xf7   : > { %v641_v51 = vsel %vm410_vm3, %v640_v49, 0.0  ;;  %v742_v54 = vsel %vm541_vm6, %v738_v52, 0.0 }
  0xf8   : > { %956 = vmatmul.msk.f32.vlgmr.msrb.gmra.mxu3 %vm438_vm2, %v641_v51  ;;  %966 = vmatmul.msk.f32.gmra.mxu1 %vm438_vm2, %v735_v50 }
 0x100   : > { %957 = vmatmul.msk.f32.gmra.mxu3 %vm438_vm2, %v639_v53  ;;  %967 = vmatmul.msk.f32.gmra.mxu1 %vm438_vm2, %v742_v54 }
 0x108   : > { %958 = vmatmul.msk.f32.gmra.mxu3 %vm438_vm2, %v643_v56 }
 0x110   : > { %959 = vmatmul.msk.f32.gmra.mxu3 %vm438_vm2, %v637_v57 }
 0x159   : > { %v719_v46 = vpop.f32.mrf.mxu0 }
 0x161   : > { %v722_v63 = vpop.f32.mrf.mxu0 }
 0x164   : > { %v777_v58 = vpop.f32.mrf.mxu1 }
 0x169   : > { %v725_v11 = vpop.f32.mrf.mxu0 }
 0x16d   : > { %v780_v1 = vpop.f32.mrf.mxu1 }
 0x171   : > { %v728_v24 = vpop.f32.mrf.mxu0 }
 0x175   : > { %v783_v15 = vpop.f32.mrf.mxu1 }
 0x17b   : > { %v678_v59 = vpop.f32.mrf.mxu3 }
 0x17c   : > { %v720_v60 = vadd.f32 %v719_v46, %v678_v59 }
 0x17d   : > { %v786_v28 = vpop.f32.mrf.mxu1 }
 0x17e   : > { %v789_v62 = vadd.f32 %v777_v58, %v720_v60 }
 0x180   : > { %v797_v0 = vmul.f32 %v1059_v61, %v789_v62 }
 0x182   : > { %v805_v2 = vadd.f32 %v1060_v9, %v797_v0 }
 0x183   : > { %v681_v3 = vpop.f32.mrf.mxu3 }
 0x184   : > { %v809_v4 = vadd.f32 %v805_v2, %v1412_v21  ;;  %v723_v5 = vadd.f32 %v722_v63, %v681_v3 }
 0x186   : > { %v813_v6 = vmax.f32 %v809_v4, 0.0  ;;  %v790_v7 = vadd.f32 %v780_v1, %v723_v5 }
 0x188   : > { %817 = vst.msk [vmem:[%s1521_s17] sm:$0xff] %vm438_vm2, %v813_v6  ;;  %v798_v8 = vmul.f32 %v1059_v61, %v790_v7 }
 0x18a   : > { %v806_v12 = vadd.f32 %v1060_v9, %v798_v8 }
 0x18b   : > { %v684_v16 = vpop.f32.mrf.mxu3 }
 0x18c   : > { %v810_v17 = vadd.f32 %v806_v12, %v1399_v13  ;;  %v726_v21 = vadd.f32 %v725_v11, %v684_v16 }
 0x18e   : > { %v814_v18 = vmax.f32 %v810_v17, 0.0  ;;  %v791_v20 = vadd.f32 %v783_v15, %v726_v21 }
 0x190   : > { %818 = vst.msk [vmem:[%s1521_s17 + $0x8] sm:$0xff] %vm438_vm2, %v814_v18  ;;  %v799_v22 = vmul.f32 %v1059_v61, %v791_v20 }
 0x192   : > { %v807_v23 = vadd.f32 %v1060_v9, %v799_v22 }
 0x193   : > { %v687_v25 = vpop.f32.mrf.mxu3 }
 0x194   : > { %v811_v26 = vadd.f32 %v807_v23, %v1402_v14  ;;  %v729_v27 = vadd.f32 %v728_v24, %v687_v25 }
 0x196   : > { %v815_v29 = vmax.f32 %v811_v26, 0.0  ;;  %v792_v13 = vadd.f32 %v786_v28, %v729_v27 }
 0x198   : > { %819 = vst.msk [vmem:[%s1521_s17 + $0x10] sm:$0xff] %vm438_vm2, %v815_v29  ;;  %v800_v30 = vmul.f32 %v1059_v61, %v792_v13 }
 0x19a   : > { %v808_v31 = vadd.f32 %v1060_v9, %v800_v30 }
 0x19c   : > { %v812_v14 = vadd.f32 %v808_v31, %v1409_v19 }
 0x19e   : > { %v816_v32 = vmax.f32 %v812_v14, 0.0 }
 0x1a0   : > { %820 = vst.msk [vmem:[%s1521_s17 + $0x18] sm:$0xff] %vm438_vm2, %v816_v32 }
 0x1a1   : > { %1178 = shalt.err (!%p1175_p10)
}
 0x1a2   : > { %s1227_s14 = smov 128   ;;  %s1228_s17 = smov 8  }
 0x1a3   : > { %996 = dma.vmem_to_hbm [thread:$0]  (%p1341_p3), %s836_s13, 512, %s838_s30, %s822_s28, %s1227_s14, %s1227_s14, %s1228_s17  }
 0x1a4 PF: > { %s852_s11 = sand.u32 1, %s1209_s24   ;;  %p1587_p12 = scmp.ge.s32.totalorder %s1221_s27, 2 }
 0x1a5   : > { %s853_s20 = scalar_lea.sflag [#allocation4], %s852_s11 }
 0x1a6   : > { %p1010_p13 = pnand %p1587_p12, %p1304_p6 }
 0x1a8   : > { %p1011_p0 = pneg %p1010_p13 }
 0x1aa   : > { %1204 = dma.done.wait (%p1011_p0), %s853_s20, 512  }
 0x1ab   : > { %1206 = vsyncadd (%p1011_p0), %s853_s20, 4294966784  ;;  %p21_p5 = scmp.ge.s32.totalorder %s1331_s22, 4   ;;  %s1588_s24 = smov %s1213_s25 }
 0x1ac   : > { %s1589_s25 = smov %s1217_s26  ;;  %s1590_s26 = smov %s1347_s10 }
 0x1ad   : > { %s1591_s27 = smov %s1331_s22  ;;  %23 = sbr.rel (!%p21_p5) target bundleno = 8 (0x8), region = 105 }
 0x1b2   :  { %859 = vsyncpa [#allocation3], 1 }
 0x1b3   :  { %861 = vsyncpa [#allocation3 + $0x1], 1 }
 0x1b4   :  { %862 = vsyncpa [#allocation6], 1 }
 0x1b5   :  { %863 = vsyncpa [#allocation4], 1 }
 0x1b6   :  { %865 = vsyncpa [#allocation4 + $0x1], 1 }

</bundles_post_ra>
